<compile_context>
chip_gen: v6e
topology: v6e:2x2x1
jax: 0.10.0
libtpu: 0.0.40
codegen_flags: <defaults>
</compile_context>

<pallas_src>
import numpy as np
import jax
import jax.numpy as jnp
from jax.experimental import pallas as pl
from jax.experimental.pallas import tpu as pltpu


# ---------------------------------------------------------------------------
# Fixed edge-detection kernels (identical to _init_edge_kernels in PyTorch)
# ---------------------------------------------------------------------------
def _make_edge_kernels():
    cdc = np.zeros((3, 3), dtype=np.float32)
    cdc[1, 1] = 1.0
    cdc -= 1.0 / 8.0
    eps = 1e-5
    cdc = cdc / (np.abs(cdc).sum() + eps)

    hdc = np.array([[-1, 0, 1], [-2, 0, 2], [-1, 0, 1]], dtype=np.float32) / 8.0
    vdc = np.array([[-1, -2, -1], [0, 0, 0], [1, 2, 1]], dtype=np.float32) / 8.0
    return cdc, hdc, vdc


CDC_K, HDC_K, VDC_K = _make_edge_kernels()

_INV_SQRT2 = 0.7071067811865476


def _tap_masks(H, W):
    """(9, 1, H*W) 0/1 masks: valid positions of each 3x3 tap under zero pad."""
    hh, ww = np.meshgrid(np.arange(H), np.arange(W), indexing="ij")
    masks = np.zeros((9, 1, H * W), dtype=np.float32)
    for t in range(9):
        di, dj = t // 3, t % 3
        ok = ((hh + di - 1 >= 0) & (hh + di - 1 < H) &
              (ww + dj - 1 >= 0) & (ww + dj - 1 < W))
        masks[t, 0] = ok.reshape(-1).astype(np.float32)
    return masks


def _erf_poly(z):
    """Abramowitz & Stegun 7.1.26 erf approximation, |abs err| <= 1.5e-7 (f32)."""
    a1, a2, a3, a4, a5 = (0.254829592, -0.284496736, 1.421413741,
                          -1.453152027, 1.061405429)
    p = 0.3275911
    sgn = jnp.where(z >= 0.0, 1.0, -1.0)
    az = jnp.abs(z)
    t = 1.0 / (1.0 + p * az)
    poly = ((((a5 * t + a4) * t + a3) * t + a2) * t + a1) * t
    return sgn * (1.0 - poly * jnp.exp(-az * az))


def _gelu_exact(z):
    """Exact (erf) GELU, matching nn.GELU() defaults."""
    return 0.5 * z * (1.0 + _erf_poly(z * _INV_SQRT2))


# ---------------------------------------------------------------------------
# Pallas kernel: one batch element per grid step, channel-major math
# ---------------------------------------------------------------------------
def _make_kernel(W):
    def kernel(x_ref, w_ref, b_ref, m_ref, o_ref):
        # x_ref : (1, C, HW)   NCHW-flattened input (channels=sublanes, pixels=lanes)
        # w_ref : (9, C, C)    folded dense-3x3 weights, (tap, c_out, c_in)
        # b_ref : (C, 1)       fusion bias (per output channel), f32
        # m_ref : (9, 1, HW)   0/1 boundary masks per tap (activation dtype)
        # o_ref : (1, C, HW)   channel-major, lane-dense output
        x = x_ref[0]                                   # (C, HW)
        C, HW = x.shape

        acc = jnp.zeros((C, HW), jnp.float32)
        for t in range(9):
            di, dj = t // 3, t % 3
            s = (di - 1) * W + (dj - 1)                # tap[p] = x[p + s]
            if s == 0:
                shifted = x
            else:
                shifted = pltpu.roll(x, shift=(-s) % HW, axis=1)   # XLU rotate
            tap = shifted * m_ref[t]                   # zero the wrapped border
            acc = acc + jnp.dot(w_ref[t], tap,
                                preferred_element_type=jnp.float32)

        fused = _gelu_exact(acc + b_ref[...])
        o_ref[0] = fused.astype(o_ref.dtype)

    return kernel


# ---------------------------------------------------------------------------
# Wrapper
# ---------------------------------------------------------------------------
def sc_edge_detection(x_nchw, fusion_w, fusion_b):
    """x_nchw: (B, C, H, W); fusion_w: (C, 3C) torch-style; fusion_b: (C,)."""
    B, C, H, W = x_nchw.shape
    HW = H * W
    act_dtype = x_nchw.dtype

    # Fold the three fixed depthwise kernels into the 1x1 fusion weight:
    #   W_eff[tap] = cdc[tap]*W1 + hdc[tap]*W2 + vdc[tap]*W3, each (C_out, C_in),
    # with groups ordered cdc, hdc, vdc to match torch.cat(..., dim=1).
    k_stack = jnp.asarray(
        np.stack([CDC_K, HDC_K, VDC_K]).reshape(3, 9), dtype=jnp.float32)       # (3, 9)
    w_groups = jnp.stack(
        [fusion_w[:, g * C:(g + 1) * C] for g in range(3)]).astype(jnp.float32)  # (3, Cout, Cin)
    w_eff = jnp.einsum("gt,goi->toi", k_stack, w_groups).astype(act_dtype)       # (9, Cout, Cin)
    b_col = fusion_b.reshape(C, 1).astype(jnp.float32)
    masks = jnp.asarray(_tap_masks(H, W), dtype=act_dtype)                       # (9, 1, HW)

    # Free view: NCHW is already row-major contiguous over (H, W).
    x_flat = x_nchw.reshape(B, C, HW)

    out_flat = pl.pallas_call(
        _make_kernel(W),
        out_shape=jax.ShapeDtypeStruct((B, C, HW), act_dtype),
        grid_spec=pltpu.PrefetchScalarGridSpec(
            num_scalar_prefetch=0,
            grid=(B,),
            in_specs=[
                pl.BlockSpec((1, C, HW), lambda b: (b, 0, 0)),
                pl.BlockSpec((9, C, C), lambda b: (0, 0, 0)),
                pl.BlockSpec((C, 1), lambda b: (0, 0)),
                pl.BlockSpec((9, 1, HW), lambda b: (0, 0, 0)),
            ],
            out_specs=pl.BlockSpec((1, C, HW), lambda b: (b, 0, 0)),
        ),
        compiler_params=pltpu.CompilerParams(
            dimension_semantics=("parallel",),
            vmem_limit_bytes=32 * 1024 * 1024,
        ),
    )(x_flat, w_eff, b_col, masks)

    # Already channel-major (B, C, H*W): reshaping to NCHW is free.
    return out_flat.reshape(B, C, H, W)


# ---------------------------------------------------------------------------
# Pure-JAX reference (mirrors the PyTorch module: depthwise -> concat -> 1x1 -> GELU)
# ---------------------------------------------------------------------------
def _reference(x_nchw, fusion_w, fusion_b):
    B, C, H, W = x_nchw.shape
    xp = jnp.pad(x_nchw.astype(jnp.float32), ((0, 0), (0, 0), (1, 1), (1, 1)))

    def dw(k):
        acc = jnp.zeros((B, C, H, W), jnp.float32)
        for di in range(3):
            for dj in range(3):
                acc = acc + float(k[di, dj]) * xp[:, :, di:di + H, dj:dj + W]
        return acc

    feats = jnp.concatenate([dw(CDC_K), dw(HDC_K), dw(VDC_K)], axis=1)   # (B, 3C, H, W)
    fused = jnp.einsum("oc,bchw->bohw", fusion_w.astype(jnp.float32), feats)
    fused = fused + fusion_b.reshape(1, C, 1, 1)
    return jax.nn.gelu(fused, approximate=False)


if __name__ == "__main__":
    B, C, H, W = 2, 4, 16, 16

    key = jax.random.PRNGKey(0)
    kx, kw, kb = jax.random.split(key, 3)
    x = jax.random.normal(kx, (B, C, H, W), dtype=jnp.float32)

    # Deterministic synthetic fusion (1x1 conv) params: weight (C, 3C), bias (C,)
    fusion_w = jax.random.normal(kw, (C, 3 * C), dtype=jnp.float32) * 0.1
    fusion_b = jax.random.normal(kb, (C,), dtype=jnp.float32) * 0.1

    out = jax.block_until_ready(sc_edge_detection(x, fusion_w, fusion_b))
    ref = jax.block_until_ready(_reference(x, fusion_w, fusion_b))

    assert out.shape == (B, C, H, W), out.shape
    np.testing.assert_allclose(np.asarray(out), np.asarray(ref), rtol=1e-5, atol=1e-5)
    print("KERNEL_OK")
</pallas_src>

<mosaic_0001>
module attributes {stable_mosaic.version = 11 : i64} {
  func.func @kernel(%arg0: i32, %arg1: memref<1x4x256xf32, #tpu.memory_space<vmem>>, %arg2: memref<9x4x4xf32, #tpu.memory_space<vmem>>, %arg3: memref<4x1xf32, #tpu.memory_space<vmem>>, %arg4: memref<9x1x256xf32, #tpu.memory_space<vmem>>, %arg5: memref<1x4x256xf32, #tpu.memory_space<vmem>>) attributes {dimension_semantics = [#tpu.dimension_semantics<parallel>], iteration_bounds = array<i64: 2>, scalar_prefetch = 0 : i64, scratch_operands = 0 : i64, tpu.core_type = #tpu.core_type<tc>, window_params = [{transform_indices = @transform_0, window_bounds = array<i64: 1, 4, 256>}, {pipeline_mode = #tpu.pipeline_mode<synchronous>, transform_indices = @transform_1, window_bounds = array<i64: 9, 4, 4>}, {pipeline_mode = #tpu.pipeline_mode<synchronous>, transform_indices = @transform_2, window_bounds = array<i64: 4, 1>}, {pipeline_mode = #tpu.pipeline_mode<synchronous>, transform_indices = @transform_3, window_bounds = array<i64: 9, 1, 256>}, {transform_indices = @transform_4, window_bounds = array<i64: 1, 4, 256>}]} {
    %c0 = arith.constant 0 : index
    %c0_0 = arith.constant 0 : index
    %c0_1 = arith.constant 0 : index
    %0 = vector.load %arg1[%c0, %c0_0, %c0_1] : memref<1x4x256xf32, #tpu.memory_space<vmem>>, vector<1x4x256xf32>
    %1 = vector.shape_cast %0 : vector<1x4x256xf32> to vector<4x256xf32>
    %cst = arith.constant 0.000000e+00 : f32
    %2 = vector.broadcast %cst : f32 to vector<4x256xf32>
    %c17_i32 = arith.constant 17 : i32
    %3 = tpu.dynamic_rotate %1 by %c17_i32 dim 1 : vector<4x256xf32>, i32 -> vector<4x256xf32>
    %c0_2 = arith.constant 0 : index
    %c0_3 = arith.constant 0 : index
    %c0_4 = arith.constant 0 : index
    %4 = vector.load %arg4[%c0_2, %c0_3, %c0_4] : memref<9x1x256xf32, #tpu.memory_space<vmem>>, vector<1x1x256xf32>
    %5 = vector.shape_cast %4 : vector<1x1x256xf32> to vector<1x256xf32>
    %6 = vector.broadcast %5 : vector<1x256xf32> to vector<4x256xf32>
    %7 = arith.mulf %3, %6 : vector<4x256xf32>
    %c0_5 = arith.constant 0 : index
    %c0_6 = arith.constant 0 : index
    %c0_7 = arith.constant 0 : index
    %8 = vector.load %arg2[%c0_5, %c0_6, %c0_7] : memref<9x4x4xf32, #tpu.memory_space<vmem>>, vector<1x4x4xf32>
    %9 = vector.shape_cast %8 : vector<1x4x4xf32> to vector<4x4xf32>
    %cst_8 = arith.constant dense<0.000000e+00> : vector<4x256xf32>
    %10 = tpu.matmul %9, %7, %cst_8 {dimension_numbers = #tpu.dot_dimension_numbers<[1], [0], [0], [1], [0, 0, 1, 1], [], []>} : vector<4x4xf32>, vector<4x256xf32>, vector<4x256xf32> -> vector<4x256xf32>
    %11 = arith.addf %2, %10 : vector<4x256xf32>
    %c16_i32 = arith.constant 16 : i32
    %12 = tpu.dynamic_rotate %1 by %c16_i32 dim 1 : vector<4x256xf32>, i32 -> vector<4x256xf32>
    %c1 = arith.constant 1 : index
    %c0_9 = arith.constant 0 : index
    %c0_10 = arith.constant 0 : index
    %13 = vector.load %arg4[%c1, %c0_9, %c0_10] : memref<9x1x256xf32, #tpu.memory_space<vmem>>, vector<1x1x256xf32>
    %14 = vector.shape_cast %13 : vector<1x1x256xf32> to vector<1x256xf32>
    %15 = vector.broadcast %14 : vector<1x256xf32> to vector<4x256xf32>
    %16 = arith.mulf %12, %15 : vector<4x256xf32>
    %c1_11 = arith.constant 1 : index
    %c0_12 = arith.constant 0 : index
    %c0_13 = arith.constant 0 : index
    %17 = vector.load %arg2[%c1_11, %c0_12, %c0_13] : memref<9x4x4xf32, #tpu.memory_space<vmem>>, vector<1x4x4xf32>
    %18 = vector.shape_cast %17 : vector<1x4x4xf32> to vector<4x4xf32>
    %cst_14 = arith.constant dense<0.000000e+00> : vector<4x256xf32>
    %19 = tpu.matmul %18, %16, %cst_14 {dimension_numbers = #tpu.dot_dimension_numbers<[1], [0], [0], [1], [0, 0, 1, 1], [], []>} : vector<4x4xf32>, vector<4x256xf32>, vector<4x256xf32> -> vector<4x256xf32>
    %20 = arith.addf %11, %19 : vector<4x256xf32>
    %c15_i32 = arith.constant 15 : i32
    %21 = tpu.dynamic_rotate %1 by %c15_i32 dim 1 : vector<4x256xf32>, i32 -> vector<4x256xf32>
    %c2 = arith.constant 2 : index
    %c0_15 = arith.constant 0 : index
    %c0_16 = arith.constant 0 : index
    %22 = vector.load %arg4[%c2, %c0_15, %c0_16] : memref<9x1x256xf32, #tpu.memory_space<vmem>>, vector<1x1x256xf32>
    %23 = vector.shape_cast %22 : vector<1x1x256xf32> to vector<1x256xf32>
    %24 = vector.broadcast %23 : vector<1x256xf32> to vector<4x256xf32>
    %25 = arith.mulf %21, %24 : vector<4x256xf32>
    %c2_17 = arith.constant 2 : index
    %c0_18 = arith.constant 0 : index
    %c0_19 = arith.constant 0 : index
    %26 = vector.load %arg2[%c2_17, %c0_18, %c0_19] : memref<9x4x4xf32, #tpu.memory_space<vmem>>, vector<1x4x4xf32>
    %27 = vector.shape_cast %26 : vector<1x4x4xf32> to vector<4x4xf32>
    %cst_20 = arith.constant dense<0.000000e+00> : vector<4x256xf32>
    %28 = tpu.matmul %27, %25, %cst_20 {dimension_numbers = #tpu.dot_dimension_numbers<[1], [0], [0], [1], [0, 0, 1, 1], [], []>} : vector<4x4xf32>, vector<4x256xf32>, vector<4x256xf32> -> vector<4x256xf32>
    %29 = arith.addf %20, %28 : vector<4x256xf32>
    %c1_i32 = arith.constant 1 : i32
    %30 = tpu.dynamic_rotate %1 by %c1_i32 dim 1 : vector<4x256xf32>, i32 -> vector<4x256xf32>
    %c3 = arith.constant 3 : index
    %c0_21 = arith.constant 0 : index
    %c0_22 = arith.constant 0 : index
    %31 = vector.load %arg4[%c3, %c0_21, %c0_22] : memref<9x1x256xf32, #tpu.memory_space<vmem>>, vector<1x1x256xf32>
    %32 = vector.shape_cast %31 : vector<1x1x256xf32> to vector<1x256xf32>
    %33 = vector.broadcast %32 : vector<1x256xf32> to vector<4x256xf32>
    %34 = arith.mulf %30, %33 : vector<4x256xf32>
    %c3_23 = arith.constant 3 : index
    %c0_24 = arith.constant 0 : index
    %c0_25 = arith.constant 0 : index
    %35 = vector.load %arg2[%c3_23, %c0_24, %c0_25] : memref<9x4x4xf32, #tpu.memory_space<vmem>>, vector<1x4x4xf32>
    %36 = vector.shape_cast %35 : vector<1x4x4xf32> to vector<4x4xf32>
    %cst_26 = arith.constant dense<0.000000e+00> : vector<4x256xf32>
    %37 = tpu.matmul %36, %34, %cst_26 {dimension_numbers = #tpu.dot_dimension_numbers<[1], [0], [0], [1], [0, 0, 1, 1], [], []>} : vector<4x4xf32>, vector<4x256xf32>, vector<4x256xf32> -> vector<4x256xf32>
    %38 = arith.addf %29, %37 : vector<4x256xf32>
    %c4 = arith.constant 4 : index
    %c0_27 = arith.constant 0 : index
    %c0_28 = arith.constant 0 : index
    %39 = vector.load %arg4[%c4, %c0_27, %c0_28] : memref<9x1x256xf32, #tpu.memory_space<vmem>>, vector<1x1x256xf32>
    %40 = vector.shape_cast %39 : vector<1x1x256xf32> to vector<1x256xf32>
    %41 = vector.broadcast %40 : vector<1x256xf32> to vector<4x256xf32>
    %42 = arith.mulf %1, %41 : vector<4x256xf32>
    %c4_29 = arith.constant 4 : index
    %c0_30 = arith.constant 0 : index
    %c0_31 = arith.constant 0 : index
    %43 = vector.load %arg2[%c4_29, %c0_30, %c0_31] : memref<9x4x4xf32, #tpu.memory_space<vmem>>, vector<1x4x4xf32>
    %44 = vector.shape_cast %43 : vector<1x4x4xf32> to vector<4x4xf32>
    %cst_32 = arith.constant dense<0.000000e+00> : vector<4x256xf32>
    %45 = tpu.matmul %44, %42, %cst_32 {dimension_numbers = #tpu.dot_dimension_numbers<[1], [0], [0], [1], [0, 0, 1, 1], [], []>} : vector<4x4xf32>, vector<4x256xf32>, vector<4x256xf32> -> vector<4x256xf32>
    %46 = arith.addf %38, %45 : vector<4x256xf32>
    %c255_i32 = arith.constant 255 : i32
    %47 = tpu.dynamic_rotate %1 by %c255_i32 dim 1 : vector<4x256xf32>, i32 -> vector<4x256xf32>
    %c5 = arith.constant 5 : index
    %c0_33 = arith.constant 0 : index
    %c0_34 = arith.constant 0 : index
    %48 = vector.load %arg4[%c5, %c0_33, %c0_34] : memref<9x1x256xf32, #tpu.memory_space<vmem>>, vector<1x1x256xf32>
    %49 = vector.shape_cast %48 : vector<1x1x256xf32> to vector<1x256xf32>
    %50 = vector.broadcast %49 : vector<1x256xf32> to vector<4x256xf32>
    %51 = arith.mulf %47, %50 : vector<4x256xf32>
    %c5_35 = arith.constant 5 : index
    %c0_36 = arith.constant 0 : index
    %c0_37 = arith.constant 0 : index
    %52 = vector.load %arg2[%c5_35, %c0_36, %c0_37] : memref<9x4x4xf32, #tpu.memory_space<vmem>>, vector<1x4x4xf32>
    %53 = vector.shape_cast %52 : vector<1x4x4xf32> to vector<4x4xf32>
    %cst_38 = arith.constant dense<0.000000e+00> : vector<4x256xf32>
    %54 = tpu.matmul %53, %51, %cst_38 {dimension_numbers = #tpu.dot_dimension_numbers<[1], [0], [0], [1], [0, 0, 1, 1], [], []>} : vector<4x4xf32>, vector<4x256xf32>, vector<4x256xf32> -> vector<4x256xf32>
    %55 = arith.addf %46, %54 : vector<4x256xf32>
    %c241_i32 = arith.constant 241 : i32
    %56 = tpu.dynamic_rotate %1 by %c241_i32 dim 1 : vector<4x256xf32>, i32 -> vector<4x256xf32>
    %c6 = arith.constant 6 : index
    %c0_39 = arith.constant 0 : index
    %c0_40 = arith.constant 0 : index
    %57 = vector.load %arg4[%c6, %c0_39, %c0_40] : memref<9x1x256xf32, #tpu.memory_space<vmem>>, vector<1x1x256xf32>
    %58 = vector.shape_cast %57 : vector<1x1x256xf32> to vector<1x256xf32>
    %59 = vector.broadcast %58 : vector<1x256xf32> to vector<4x256xf32>
    %60 = arith.mulf %56, %59 : vector<4x256xf32>
    %c6_41 = arith.constant 6 : index
    %c0_42 = arith.constant 0 : index
    %c0_43 = arith.constant 0 : index
    %61 = vector.load %arg2[%c6_41, %c0_42, %c0_43] : memref<9x4x4xf32, #tpu.memory_space<vmem>>, vector<1x4x4xf32>
    %62 = vector.shape_cast %61 : vector<1x4x4xf32> to vector<4x4xf32>
    %cst_44 = arith.constant dense<0.000000e+00> : vector<4x256xf32>
    %63 = tpu.matmul %62, %60, %cst_44 {dimension_numbers = #tpu.dot_dimension_numbers<[1], [0], [0], [1], [0, 0, 1, 1], [], []>} : vector<4x4xf32>, vector<4x256xf32>, vector<4x256xf32> -> vector<4x256xf32>
    %64 = arith.addf %55, %63 : vector<4x256xf32>
    %c240_i32 = arith.constant 240 : i32
    %65 = tpu.dynamic_rotate %1 by %c240_i32 dim 1 : vector<4x256xf32>, i32 -> vector<4x256xf32>
    %c7 = arith.constant 7 : index
    %c0_45 = arith.constant 0 : index
    %c0_46 = arith.constant 0 : index
    %66 = vector.load %arg4[%c7, %c0_45, %c0_46] : memref<9x1x256xf32, #tpu.memory_space<vmem>>, vector<1x1x256xf32>
    %67 = vector.shape_cast %66 : vector<1x1x256xf32> to vector<1x256xf32>
    %68 = vector.broadcast %67 : vector<1x256xf32> to vector<4x256xf32>
    %69 = arith.mulf %65, %68 : vector<4x256xf32>
    %c7_47 = arith.constant 7 : index
    %c0_48 = arith.constant 0 : index
    %c0_49 = arith.constant 0 : index
    %70 = vector.load %arg2[%c7_47, %c0_48, %c0_49] : memref<9x4x4xf32, #tpu.memory_space<vmem>>, vector<1x4x4xf32>
    %71 = vector.shape_cast %70 : vector<1x4x4xf32> to vector<4x4xf32>
    %cst_50 = arith.constant dense<0.000000e+00> : vector<4x256xf32>
    %72 = tpu.matmul %71, %69, %cst_50 {dimension_numbers = #tpu.dot_dimension_numbers<[1], [0], [0], [1], [0, 0, 1, 1], [], []>} : vector<4x4xf32>, vector<4x256xf32>, vector<4x256xf32> -> vector<4x256xf32>
    %73 = arith.addf %64, %72 : vector<4x256xf32>
    %c239_i32 = arith.constant 239 : i32
    %74 = tpu.dynamic_rotate %1 by %c239_i32 dim 1 : vector<4x256xf32>, i32 -> vector<4x256xf32>
    %c8 = arith.constant 8 : index
    %c0_51 = arith.constant 0 : index
    %c0_52 = arith.constant 0 : index
    %75 = vector.load %arg4[%c8, %c0_51, %c0_52] : memref<9x1x256xf32, #tpu.memory_space<vmem>>, vector<1x1x256xf32>
    %76 = vector.shape_cast %75 : vector<1x1x256xf32> to vector<1x256xf32>
    %77 = vector.broadcast %76 : vector<1x256xf32> to vector<4x256xf32>
    %78 = arith.mulf %74, %77 : vector<4x256xf32>
    %c8_53 = arith.constant 8 : index
    %c0_54 = arith.constant 0 : index
    %c0_55 = arith.constant 0 : index
    %79 = vector.load %arg2[%c8_53, %c0_54, %c0_55] : memref<9x4x4xf32, #tpu.memory_space<vmem>>, vector<1x4x4xf32>
    %80 = vector.shape_cast %79 : vector<1x4x4xf32> to vector<4x4xf32>
    %cst_56 = arith.constant dense<0.000000e+00> : vector<4x256xf32>
    %81 = tpu.matmul %80, %78, %cst_56 {dimension_numbers = #tpu.dot_dimension_numbers<[1], [0], [0], [1], [0, 0, 1, 1], [], []>} : vector<4x4xf32>, vector<4x256xf32>, vector<4x256xf32> -> vector<4x256xf32>
    %82 = arith.addf %73, %81 : vector<4x256xf32>
    %c0_57 = arith.constant 0 : index
    %c0_58 = arith.constant 0 : index
    %83 = vector.load %arg3[%c0_57, %c0_58] : memref<4x1xf32, #tpu.memory_space<vmem>>, vector<4x1xf32>
    %84 = vector.broadcast %83 : vector<4x1xf32> to vector<4x256xf32>
    %85 = arith.addf %82, %84 : vector<4x256xf32>
    %cst_59 = arith.constant 5.000000e-01 : f32
    %86 = vector.broadcast %cst_59 : f32 to vector<4x256xf32>
    %87 = arith.mulf %86, %85 : vector<4x256xf32>
    %cst_60 = arith.constant 0.707106769 : f32
    %88 = vector.broadcast %cst_60 : f32 to vector<4x256xf32>
    %89 = arith.mulf %85, %88 : vector<4x256xf32>
    %cst_61 = arith.constant 0.000000e+00 : f32
    %90 = vector.broadcast %cst_61 : f32 to vector<4x256xf32>
    %91 = arith.cmpf oge, %89, %90 : vector<4x256xf32>
    %cst_62 = arith.constant 1.000000e+00 : f32
    %cst_63 = arith.constant -1.000000e+00 : f32
    %92 = vector.broadcast %cst_62 : f32 to vector<4x256xf32>
    %93 = vector.broadcast %cst_63 : f32 to vector<4x256xf32>
    %94 = arith.select %91, %92, %93 : vector<4x256xi1>, vector<4x256xf32>
    %95 = math.absf %89 : vector<4x256xf32>
    %cst_64 = arith.constant 0.327591091 : f32
    %96 = vector.broadcast %cst_64 : f32 to vector<4x256xf32>
    %97 = arith.mulf %96, %95 : vector<4x256xf32>
    %cst_65 = arith.constant 1.000000e+00 : f32
    %98 = vector.broadcast %cst_65 : f32 to vector<4x256xf32>
    %99 = arith.addf %98, %97 : vector<4x256xf32>
    %cst_66 = arith.constant 1.000000e+00 : f32
    %100 = vector.broadcast %cst_66 : f32 to vector<4x256xf32>
    %101 = arith.divf %100, %99 : vector<4x256xf32>
    %cst_67 = arith.constant 1.06140542 : f32
    %102 = vector.broadcast %cst_67 : f32 to vector<4x256xf32>
    %103 = arith.mulf %102, %101 : vector<4x256xf32>
    %cst_68 = arith.constant -1.45315206 : f32
    %104 = vector.broadcast %cst_68 : f32 to vector<4x256xf32>
    %105 = arith.addf %103, %104 : vector<4x256xf32>
    %106 = arith.mulf %105, %101 : vector<4x256xf32>
    %cst_69 = arith.constant 1.42141378 : f32
    %107 = vector.broadcast %cst_69 : f32 to vector<4x256xf32>
    %108 = arith.addf %106, %107 : vector<4x256xf32>
    %109 = arith.mulf %108, %101 : vector<4x256xf32>
    %cst_70 = arith.constant -0.284496725 : f32
    %110 = vector.broadcast %cst_70 : f32 to vector<4x256xf32>
    %111 = arith.addf %109, %110 : vector<4x256xf32>
    %112 = arith.mulf %111, %101 : vector<4x256xf32>
    %cst_71 = arith.constant 0.254829586 : f32
    %113 = vector.broadcast %cst_71 : f32 to vector<4x256xf32>
    %114 = arith.addf %112, %113 : vector<4x256xf32>
    %115 = arith.mulf %114, %101 : vector<4x256xf32>
    %cst_72 = arith.constant 0.000000e+00 : f32
    %116 = vector.broadcast %cst_72 : f32 to vector<4x256xf32>
    %117 = arith.subf %116, %95 : vector<4x256xf32>
    %118 = arith.mulf %117, %95 : vector<4x256xf32>
    %119 = math.exp %118 : vector<4x256xf32>
    %120 = arith.mulf %115, %119 : vector<4x256xf32>
    %cst_73 = arith.constant 1.000000e+00 : f32
    %121 = vector.broadcast %cst_73 : f32 to vector<4x256xf32>
    %122 = arith.subf %121, %120 : vector<4x256xf32>
    %123 = arith.mulf %94, %122 : vector<4x256xf32>
    %cst_74 = arith.constant 1.000000e+00 : f32
    %124 = vector.broadcast %cst_74 : f32 to vector<4x256xf32>
    %125 = arith.addf %124, %123 : vector<4x256xf32>
    %126 = arith.mulf %87, %125 : vector<4x256xf32>
    %c0_75 = arith.constant 0 : index
    %c0_76 = arith.constant 0 : index
    %c0_77 = arith.constant 0 : index
    %127 = vector.load %arg5[%c0_75, %c0_76, %c0_77] : memref<1x4x256xf32, #tpu.memory_space<vmem>>, vector<1x4x256xf32>
    %128 = vector.shape_cast %127 : vector<1x4x256xf32> to vector<4x256xf32>
    %129 = vector.shape_cast %126 : vector<4x256xf32> to vector<1x4x256xf32>
    tpu.vector_store %arg5[%c0_75, %c0_76, %c0_77], %129 {strides = array<i32>} : memref<1x4x256xf32, #tpu.memory_space<vmem>>, vector<1x4x256xf32>,
    return
  }
  func.func @transform_0(%arg0: i32) -> (i32, i32, i32) {
    %c0_i32 = arith.constant 0 : i32
    %c0_i32_0 = arith.constant 0 : i32
    %c0_i32_1 = arith.constant 0 : i32
    return %arg0, %c0_i32, %c0_i32_0 : i32, i32, i32
  }
  func.func @transform_1(%arg0: i32) -> (i32, i32, i32) {
    %c0_i32 = arith.constant 0 : i32
    %c0_i32_0 = arith.constant 0 : i32
    %c0_i32_1 = arith.constant 0 : i32
    %c0_i32_2 = arith.constant 0 : i32
    return %c0_i32, %c0_i32_0, %c0_i32_1 : i32, i32, i32
  }
  func.func @transform_2(%arg0: i32) -> (i32, i32) {
    %c0_i32 = arith.constant 0 : i32
    %c0_i32_0 = arith.constant 0 : i32
    %c0_i32_1 = arith.constant 0 : i32
    return %c0_i32, %c0_i32_0 : i32, i32
  }
  func.func @transform_3(%arg0: i32) -> (i32, i32, i32) {
    %c0_i32 = arith.constant 0 : i32
    %c0_i32_0 = arith.constant 0 : i32
    %c0_i32_1 = arith.constant 0 : i32
    %c0_i32_2 = arith.constant 0 : i32
    return %c0_i32, %c0_i32_0, %c0_i32_1 : i32, i32, i32
  }
  func.func @transform_4(%arg0: i32) -> (i32, i32, i32) {
    %c0_i32 = arith.constant 0 : i32
    %c0_i32_0 = arith.constant 0 : i32
    %c0_i32_1 = arith.constant 0 : i32
    return %arg0, %c0_i32, %c0_i32_0 : i32, i32, i32
  }
}

</mosaic_0001>

<bundles_post_ra>
// kernel: tpu_custom_call.1
= control target key start
LH: loop header
LB: loop body
LE: loop exit
PB: predicated region body
PF: predicated region fallthrough
CT: control target
= control target key end

     0   :  { %9 = vsyncpa [#allocation3], 0  ;;  %s1738_s0 = inlined_call_operand.vmem [shape: f32[2,4,256], index: 0, kind: input, shape index: {}]   ;;  %s1739_s1 = inlined_call_operand.vmem [shape: f32[9,4,4], index: 1, kind: input, shape index: {}]   ;;  %s1740_s2 = inlined_call_operand.vmem [shape: f32[4,1], index: 2, kind: input, shape index: {}]   ;;  %s1741_s3 = inlined_call_operand.vmem [shape: f32[9,1,256], index: 3, kind: input, shape index: {}]   ;;  %s1742_s4 = inlined_call_operand.hbm [shape: f32[2,4,256], index: 4, kind: output, shape index: {}]  }
   0x1   :  { %11 = vsyncpa [#allocation3 + $0x1], 0  ;;  %s1501_s15 = smov 0   ;;  %s1503_s16 = smov 0  }
   0x2   :  { %s1505_s17 = smov 0   ;;  %s1507_s18 = smov 0  }
   0x3 LB: > { %s1522_s19 = sadd.s32 4294967295, %s1462_s18   ;;  %s1285_s20 = sadd.s32 4294967294, %s1462_s18   ;;  %s1462_s18 = sphi %s1507_s18, %s1748_s18   ;;  %s1458_s17 = sphi %s1505_s17, %s1747_s17   ;;  %s1454_s16 = sphi %s1503_s16, %s1746_s16   ;;  %s1450_s15 = sphi %s1501_s15, %s1745_s15  }
   0x4   : > { %s1526_s21 = sadd.s32 1, %s1462_s18   ;;  %s113_s22 = sadd.s32 1, %s1458_s17 }
   0x5   : > { %s110_s23 = ssub.s32 %s1462_s18, %s1526_s21  ;;  %p123_p0 = scmp.ne.s32.totalorder %s1458_s17, %s1454_s16 }
   0x6   : > { %p111_p1 = scmp.eq.s32.totalorder %s110_s23, 0  ;;  %p124_p2 = scmp.eq.s32.totalorder %s1522_s19, 1 }
   0x7   : > { %p129_p3 = scmp.ne.s32.totalorder %s1454_s16, %s1450_s15  ;;  %p130_p4 = scmp.eq.s32.totalorder %s1285_s20, 1 }
   0x8   : > { %s1537_s24 = scalar_select %p111_p1, %s1458_s17, %s113_s22  }
   0x9   : > { %p1539_p5 = por %p124_p2, %p123_p0  ;;  %p1543_p6 = por %p130_p4, %p129_p3 }
   0xa   : > { %p1288_p7 = scmp.ge.s32.totalorder %s1462_s18, 1  ;;  %p165_p8 = scmp.lt.s32.totalorder %s1462_s18, 3 }
   0xc   : > { %p166_p9 = pnand %p1288_p7, %p165_p8 }
   0xd   : > { %p191_p10 = scmp.lt.s32.totalorder (!%p166_p9), %s1522_s19, 1  ;;  %s1465_s6 = smov (!%p166_p9), 17  }
   0xe   : > { %169 = sbr.rel (%p166_p9) target bundleno = 436 (0x1b4), region = 36  ;;  %s1466_s7 = smov (!%p166_p9), 16  }
   0xf   : > { %s1467_s8 = smov (!%p166_p9), 15   ;;  %s1468_s9 = smov (!%p166_p9), 1  }
  0x10   : > { %s1469_s10 = smov (!%p166_p9), 127   ;;  %s1470_s11 = smov (!%p166_p9), 113  }
  0x11   : > { %s1472_s12 = smov (!%p166_p9), 112   ;;  %s1473_s13 = smov (!%p166_p9), 111  }
  0x12   : > { %s1341_s29 = sshll.u32 (!%p166_p9), %s1522_s19, 7 }
  0x13   : > { %s192_s27 = scalar_select %p191_p10, %s1522_s19, 1  ;;  %v1464_v1 = vmov 0.0   ;;  %v1471_v3 = vmov 0   ;;  %v1144_v4 = vld [vmem:[%s1740_s2] sm:$0xf]  ;;  %v204_v5 = vlaneseq  ;;  %vm252_vm1 = vcmask 1043456  }
  0x14   : > { %323 = vmatprep.mubr.f32.mxu0 %v1464_v1  ;;  %403 = vmatprep.mubr.f32.mxu1 %v1464_v1  ;;  %v1310_v7 = vld [vmem:[%s1741_s3 + $0x8] sm:$0x3]  ;;  %v209_v11 = vld [vmem:[%s1741_s3] sm:$0x3]  ;;  %v1292_v18 = vld [vmem:[%s1741_s3 + $0x2] sm:$0x3] }
  0x15   : > { %s1340_s28 = sshll.u32 %s192_s27, 3  ;;  %1392 = vset.pattern.permute.xlu0 %v1471_v3  ;;  %v212_v6 = vshrl.u32 %v204_v5, 7  ;;  %v1574_v8 = vand.u32 127, %v204_v5  ;;  %v1300_v24 = vld [vmem:[%s1741_s3 + $0x4] sm:$0x3]  ;;  %vm248_vm5 = vcmask 31744  }
  0x16   : > { %s195_s5 = scalar_lea.vmem %s1738_s0, %s1340_s28  ;;  %v1305_v29 = vld [vmem:[%s1741_s3 + $0x6] sm:$0x3]  ;;  %v223_v30 = vld [vmem:[%s1739_s1] sm:$0xf]  ;;  %v1315_v44 = vld [vmem:[%s1741_s3 + $0xa] sm:$0x3] }
  0x17   : > { %v1554_v0 = vld [vmem:[%s195_s5] sm:$0xff]  ;;  %v1576_v9 = vsub.s32 0, %v212_v6  ;;  %v1578_v10 = vsub.s32 1, %v212_v6  ;;  %vm206_vm0 = vcmp.lt.s32.totalorder %v1574_v8, 17  ;;  %vm414_vm2 = vcmp.lt.s32.totalorder %v1574_v8, 15  ;;  %s188_s27 = sand.u32 1, %s1454_s16  }
  0x18   : > { %200 = vrot.lane.b32.xlu1 %v1554_v0, %s1465_s6  ;;  %224 = vrot.lane.b32.xlu0 %v1554_v0, %s1466_s7  ;;  %v198_v2 = vcombine.high %v1554_v0, %v1554_v0  ;;  %vm228_vm3 = vcmp.lt.s32.totalorder %v1574_v8, 16  ;;  %vm520_vm4 = vcmp.lt.s32.totalorder %v1574_v8, 1  ;;  %v1293_v45 = vld [vmem:[%s1739_s1 + $0x4] sm:$0xf]  ;;  %vm724_vm6 = vcmp.lt.s32.totalorder %v1574_v8, 127  ;;  %s1289_s28 = sshll.u32 %s188_s27, 3 }
  0x19   : > { %v628_v14 = vrot.slane %v1310_v7, %v1576_v9  ;;  %v632_v15 = vrot.slane %v1310_v7, %v1578_v10  ;;  %v214_v16 = vrot.slane %v209_v11, %v1576_v9  ;;  %v218_v17 = vrot.slane %v209_v11, %v1578_v10  ;;  %v1320_v57 = vld [vmem:[%s1741_s3 + $0xc] sm:$0x3]  ;;  %v1301_v58 = vld [vmem:[%s1739_s1 + $0x8] sm:$0xf]  ;;  %v1325_v5 = vld [vmem:[%s1741_s3 + $0xe] sm:$0x3] }
  0x1a   : > { %v237_v27 = vrot.slane %v1292_v18, %v1576_v9  ;;  %v241_v28 = vrot.slane %v1292_v18, %v1578_v10  ;;  %v423_v31 = vrot.slane %v1300_v24, %v1576_v9  ;;  %v427_v32 = vrot.slane %v1300_v24, %v1578_v10  ;;  %v1306_v59 = vld [vmem:[%s1739_s1 + $0xc] sm:$0xf]  ;;  %v1311_v6 = vld [vmem:[%s1739_s1 + $0x10] sm:$0xf]  ;;  %v1316_v7 = vld [vmem:[%s1739_s1 + $0x14] sm:$0xf] }
  0x1b   : > { %v633_v21 = vcombine.low %v628_v14, %v632_v15  ;;  %v529_v39 = vrot.slane %v1305_v29, %v1576_v9  ;;  %v533_v43 = vrot.slane %v1305_v29, %v1578_v10  ;;  %v733_v53 = vrot.slane %v1315_v44, %v1576_v9  ;;  %v1326_v29 = vld [vmem:[%s1739_s1 + $0x1c] sm:$0xf]  ;;  %s190_s30 = scalar_lea.vmem [#allocation2], %s1289_s28 }
  0x1c   : > { %410 = vrot.lane.b32.xlu0 %v1554_v0, %s1467_s8  ;;  %202 = vrot.lane.b32.xlu1 %v198_v2, %s1465_s6  ;;  %v737_v56 = vrot.slane %v1315_v44, %v1578_v10  ;;  %vm830_vm7 = vcmp.lt.s32.totalorder %v1574_v8, 113  ;;  %v945_v15 = vrot.slane %v1325_v5, %v1576_v9  ;;  %vm936_vm8 = vcmp.lt.s32.totalorder %v1574_v8, 112  ;;  %s1226_s5 = sshll.u32 %s190_s30, 4  ;;  %s1227_s5 = int_to_ptr.vmem [resolvable:$true] %s1226_s5 }
  0x1d   : > { %v635_v35 = vmul.f32 %v633_v21, %v1554_v0  ;;  %v949_v18 = vrot.slane %v1325_v5, %v1578_v10  ;;  %vm1042_vm9 = vcmp.lt.s32.totalorder %v1574_v8, 111 }
  0x1f   : > { %v639_v49 = vcombine.high %v635_v35, %v635_v35 }
  0x20   : > { %412 = vrot.lane.b32.xlu1 %v198_v2, %s1467_s8  ;;  %226 = vrot.lane.b32.xlu0 %v198_v2, %s1466_s7  ;;  %s1224_s8 = scalar_lea.hbm %s1742_s4, %s1341_s29 }
  0x24   : > { %518 = vrot.lane.b32.xlu1 %v198_v2, %s1468_s9  ;;  %516 = vrot.lane.b32.xlu0 %v1554_v0, %s1468_s9  ;;  %s1212_s9 = scalar_lea.sflag [#allocation3], %s188_s27 }
  0x28   : > { %722 = vrot.lane.b32.xlu1 %v198_v2, %s1469_s10  ;;  %720 = vrot.lane.b32.xlu0 %v1554_v0, %s1469_s10  ;;  %s1402_s10 = scalar_lea.vmem %s1227_s5, 128 }
  0x29   : > { %p1403_p11 = scmp.ne.s32.totalorder %s1227_s5, %s1402_s10 }
  0x2b   : > { %p1404_p12 = pnand %p1403_p11, %p1539_p5 }
  0x2c   : > { %828 = vrot.lane.b32.xlu1 %v198_v2, %s1470_s11  ;;  %826 = vrot.lane.b32.xlu0 %v1554_v0, %s1470_s11  ;;  %s1475_s11 = smov [#allocation2]  }
  0x2d   : > { %p1405_p13 = pneg %p1404_p12 }
  0x30   : > { %934 = vrot.lane.b32.xlu1 %v198_v2, %s1472_s12  ;;  %932 = vrot.lane.b32.xlu0 %v1554_v0, %s1472_s12  ;;  %s1406_s12 = sshll.u32 %s1475_s11, 4  ;;  %s1407_s12 = int_to_ptr.vmem [resolvable:$false] %s1406_s12 }
  0x31   : > { %s1408_s19 = scalar_lea.vmem %s1407_s12, 256  ;;  %p1409_p0 = scmp.lt.s32.totalorder %s1227_s5, %s1407_s12 }
  0x32   : > { %p1410_p1 = scmp.lt.s32.totalorder %s1408_s19, %s1402_s10 }
  0x34   : > { %1040 = vrot.lane.b32.xlu1 %v198_v2, %s1473_s13  ;;  %1038 = vrot.lane.b32.xlu0 %v1554_v0, %s1473_s13  ;;  %v839_v0 = vrot.slane %v1320_v57, %v1576_v9  ;;  %p1411_p2 = por %p1410_p1, %p1409_p0 }
  0x36   : > { %p1412_p3 = pnand %p1411_p2, %p1405_p13 }
  0x38   : > { %1147 = vperm.xlu0 %1392, %v1144_v4   ;;  %v843_v4 = vrot.slane %v1320_v57, %v1578_v10 }
  0x8a   : > { %v201_v12 = vpop.permute.xlu1 %200  ;;  %v225_v13 = vpop.permute.xlu0 %224 }
  0x8e   : > { %v411_v19 = vpop.permute.xlu0 %410  ;;  %v203_v20 = vpop.permute.xlu1 %202 }
  0x8f   : > { %v207_v22 = vsel %vm206_vm0, %v201_v12, %v203_v20  ;;  %v208_v23 = vsel %vm206_vm0, %v203_v20, %v201_v12  ;;  %v1321_v20 = vld [vmem:[%s1739_s1 + $0x18] sm:$0xf] }
  0x90   : > { %v221_v25 = vmul.f32 %v214_v16, %v208_v23  ;;  %v222_v26 = vmul.f32 %v218_v17, %v207_v22 }
  0x92   : > { %1297 = vmatprep.subr.msk.mxu1 %vm252_vm1, %v222_v26  ;;  %v413_v33 = vpop.permute.xlu1 %412  ;;  %v227_v34 = vpop.permute.xlu0 %226 }
  0x93   : > { %v415_v36 = vsel %vm414_vm2, %v411_v19, %v413_v33  ;;  %v229_v37 = vsel %vm228_vm3, %v225_v13, %v227_v34  ;;  %v230_v38 = vsel %vm228_vm3, %v227_v34, %v225_v13  ;;  %1298 = vmatpush1.msk.msra.mxu1 %vm252_vm1, %v221_v25  ;;  %v416_v40 = vsel %vm414_vm2, %v413_v33, %v411_v19  ;;  %v1330_v19 = vld [vmem:[%s1741_s3 + $0x10] sm:$0x3] }
  0x94   : > { %v244_v41 = vmul.f32 %v237_v27, %v230_v38  ;;  %v245_v42 = vmul.f32 %v241_v28, %v229_v37  ;;  %1299 = vmatmul.mubr.msk.f32.vlgmr.msra.gmra.mxu1 %vm248_vm5, %v223_v30  ;;  %v431_v46 = vmul.f32 %v427_v32, %v415_v36  ;;  %v430_v50 = vmul.f32 %v423_v31, %v416_v40 }
  0x95   : > { %613 = vmatprep.mubr.f32.mxu1 %v1464_v1  ;;  %v1051_v27 = vrot.slane %v1330_v19, %v1576_v9  ;;  %v1055_v28 = vrot.slane %v1330_v19, %v1578_v10  ;;  %v1331_v10 = vld [vmem:[%s1739_s1 + $0x20] sm:$0xf] }
  0x96   : > { %v519_v47 = vpop.permute.xlu1 %518  ;;  %1294 = vmatprep.subr.msk.mxu0 %vm252_vm1, %v245_v42  ;;  %v517_v48 = vpop.permute.xlu0 %516 }
  0x97   : > { %v521_v51 = vsel %vm520_vm4, %v517_v48, %v519_v47  ;;  %v522_v52 = vsel %vm520_vm4, %v519_v47, %v517_v48  ;;  %1295 = vmatpush1.msk.msra.mxu0 %vm252_vm1, %v244_v41 }
  0x98   : > { %v536_v54 = vmul.f32 %v529_v39, %v522_v52  ;;  %v537_v55 = vmul.f32 %v533_v43, %v521_v51  ;;  %1302 = vmatprep.subr.msk.mxu0 %vm252_vm1, %v431_v46  ;;  %1296 = vmatmul.mubr.msk.f32.vlgmr.msra.gmra.mxu0 %vm248_vm5, %v1293_v45 }
  0x99   : > { %1303 = vmatpush1.msk.msra.mxu0 %vm252_vm1, %v430_v50  ;;  %507 = vmatprep.mubr.f32.mxu0 %v1464_v1 }
  0x9a   : > { %v723_v60 = vpop.permute.xlu1 %722  ;;  %1307 = vmatprep.subr.msk.mxu1 %vm252_vm1, %v537_v55  ;;  %v721_v61 = vpop.permute.xlu0 %720  ;;  %1312 = vmatprep.subr.msk.mxu0 %vm252_vm1, %v639_v49 }
  0x9b   : > { %v725_v62 = vsel %vm724_vm6, %v721_v61, %v723_v60  ;;  %v726_v63 = vsel %vm724_vm6, %v723_v60, %v721_v61  ;;  %1308 = vmatpush1.msk.msra.mxu1 %vm252_vm1, %v536_v54 }
  0x9c   : > { %v740_v2 = vmul.f32 %v733_v53, %v725_v62  ;;  %v741_v3 = vmul.f32 %v737_v56, %v726_v63  ;;  %1304 = vmatmul.mubr.msk.f32.vlgmr.msra.gmra.mxu0 %vm248_vm5, %v1301_v58  ;;  %1309 = vmatmul.mubr.msk.f32.vlgmr.msra.gmra.mxu1 %vm248_vm5, %v1306_v59 }
  0x9d   : > { %1313 = vmatpush1.msk.msra.mxu0 %vm252_vm1, %v635_v35  ;;  %711 = vmatprep.mubr.f32.mxu0 %v1464_v1 }
  0x9e   : > { %v829_v11 = vpop.permute.xlu1 %828  ;;  %1317 = vmatprep.subr.msk.mxu1 %vm252_vm1, %v741_v3  ;;  %v827_v12 = vpop.permute.xlu0 %826  ;;  %817 = vmatprep.mubr.f32.mxu1 %v1464_v1 }
  0x9f   : > { %v831_v13 = vsel %vm830_vm7, %v827_v12, %v829_v11  ;;  %v832_v14 = vsel %vm830_vm7, %v829_v11, %v827_v12  ;;  %1318 = vmatpush1.msk.msra.mxu1 %vm252_vm1, %v740_v2 }
  0xa0   : > { %v846_v16 = vmul.f32 %v839_v0, %v831_v13  ;;  %v847_v17 = vmul.f32 %v843_v4, %v832_v14  ;;  %1314 = vmatmul.mubr.msk.f32.vlgmr.msra.gmra.mxu0 %vm248_vm5, %v1311_v6  ;;  %1319 = vmatmul.mubr.msk.f32.vlgmr.msra.gmra.mxu1 %vm248_vm5, %v1316_v7 }
  0xa1   : > { %923 = vmatprep.mubr.f32.mxu0 %v1464_v1  ;;  %1029 = vmatprep.mubr.f32.mxu1 %v1464_v1 }
  0xa2   : > { %v935_v21 = vpop.permute.xlu1 %934  ;;  %1322 = vmatprep.subr.msk.mxu0 %vm252_vm1, %v847_v17  ;;  %v933_v22 = vpop.permute.xlu0 %932 }
  0xa3   : > { %v937_v23 = vsel %vm936_vm8, %v933_v22, %v935_v21  ;;  %v938_v24 = vsel %vm936_vm8, %v935_v21, %v933_v22  ;;  %1323 = vmatpush1.msk.msra.mxu0 %vm252_vm1, %v846_v16 }
  0xa4   : > { %v952_v25 = vmul.f32 %v945_v15, %v937_v23  ;;  %v953_v26 = vmul.f32 %v949_v18, %v938_v24  ;;  %1324 = vmatmul.mubr.msk.f32.vlgmr.msra.gmra.mxu0 %vm248_vm5, %v1321_v20 }
  0xa5   : > { %1135 = vmatprep.mubr.f32.mxu0 %v1464_v1 }
  0xa6   : > { %v1041_v30 = vpop.permute.xlu1 %1040  ;;  %1327 = vmatprep.subr.msk.mxu1 %vm252_vm1, %v953_v26  ;;  %v1039_v31 = vpop.permute.xlu0 %1038 }
  0xa7   : > { %v1043_v32 = vsel %vm1042_vm9, %v1039_v31, %v1041_v30  ;;  %v1044_v8 = vsel %vm1042_vm9, %v1041_v30, %v1039_v31  ;;  %1328 = vmatpush1.msk.msra.mxu1 %vm252_vm1, %v952_v25 }
  0xa8   : > { %v1058_v33 = vmul.f32 %v1051_v27, %v1043_v32  ;;  %v1059_v9 = vmul.f32 %v1055_v28, %v1044_v8  ;;  %1329 = vmatmul.mubr.msk.f32.vlgmr.msra.gmra.mxu1 %vm248_vm5, %v1326_v29 }
  0xaa   : > { %1332 = vmatprep.subr.msk.mxu0 %vm252_vm1, %v1059_v9 }
  0xab   : > { %1333 = vmatpush1.msk.msra.mxu0 %vm252_vm1, %v1058_v33 }
  0xac   : > { %1334 = vmatmul.mubr.msk.f32.vlgmr.msra.gmra.mxu0 %vm248_vm5, %v1331_v10 }
  0xb3   : > { %v1148_v63 = vpop.permute.xlu0 %1147 }
 0x154   : > { %v405_v1 = vpop.f32.mrf.mxu1 }
 0x156   : > { %v407_v35 = vpop.f32.mrf.mxu1 }
 0x158   : > { %v325_v34 = vpop.f32.mrf.mxu0 }
 0x159   : > { %v406_v36 = vadd.f32 %v405_v1, %v325_v34 }
 0x15a   : > { %v327_v37 = vpop.f32.mrf.mxu0 }
 0x15b   : > { %v408_v38 = vadd.f32 %v407_v35, %v327_v37 }
 0x15c   : > { %v509_v39 = vpop.f32.mrf.mxu0  ;;  %v615_v40 = vpop.f32.mrf.mxu1 }
 0x15d   : > { %v514_v41 = vadd.f32 %v509_v39, %v406_v36 }
 0x15e   : > { %v511_v42 = vpop.f32.mrf.mxu0  ;;  %v617_v43 = vpop.f32.mrf.mxu1 }
 0x15f   : > { %v515_v44 = vadd.f32 %v511_v42, %v408_v38  ;;  %v620_v45 = vadd.f32 %v615_v40, %v514_v41 }
 0x160   : > { %v713_v46 = vpop.f32.mrf.mxu0  ;;  %v819_v47 = vpop.f32.mrf.mxu1 }
 0x161   : > { %v621_v48 = vadd.f32 %v617_v43, %v515_v44  ;;  %v718_v49 = vadd.f32 %v713_v46, %v620_v45  ;;  %v1474_v45 = vmov -1.0  }
 0x162   : > { %v715_v50 = vpop.f32.mrf.mxu0  ;;  %v821_v53 = vpop.f32.mrf.mxu1 }
 0x163   : > { %v719_v51 = vadd.f32 %v715_v50, %v621_v48  ;;  %v824_v52 = vadd.f32 %v819_v47, %v718_v49 }
 0x164   : > { %v925_v54 = vpop.f32.mrf.mxu0 }
 0x165   : > { %v825_v55 = vadd.f32 %v821_v53, %v719_v51  ;;  %v930_v56 = vadd.f32 %v925_v54, %v824_v52 }
 0x166   : > { %v927_v57 = vpop.f32.mrf.mxu0 }
 0x167   : > { %v931_v60 = vadd.f32 %v927_v57, %v825_v55 }
 0x168   : > { %v1031_v58 = vpop.f32.mrf.mxu1 }
 0x169   : > { %v1036_v61 = vadd.f32 %v1031_v58, %v930_v56 }
 0x16a   : > { %v1033_v59 = vpop.f32.mrf.mxu1 }
 0x16b   : > { %v1037_v0 = vadd.f32 %v1033_v59, %v931_v60 }
 0x16c   : > { %v1137_v62 = vpop.f32.mrf.mxu0 }
 0x16d   : > { %v1142_v2 = vadd.f32 %v1137_v62, %v1036_v61 }
 0x16e   : > { %v1139_v3 = vpop.f32.mrf.mxu0 }
 0x16f   : > { %v1143_v4 = vadd.f32 %v1139_v3, %v1037_v0  ;;  %v1150_v5 = vadd.f32 %v1148_v63, %v1142_v2 }
 0x171   : > { %v1151_v6 = vadd.f32 %v1148_v63, %v1143_v4  ;;  %v1154_v7 = vmul.f32 0.70710677, %v1150_v5  ;;  %v1152_v52 = vmul.f32 0.5, %v1150_v5 }
 0x173   : > { %v1155_v11 = vmul.f32 0.70710677, %v1151_v6  ;;  %v1160_v12 = vand.u32 2147483647, %v1154_v7  ;;  %vm1156_vm10 = vcmp.ge.f32.partialorder %v1154_v7, 0.0  ;;  %v1153_v53 = vmul.f32 0.5, %v1151_v6 }
 0x174   : > { %v1158_v46 = vsel %vm1156_vm10, 1.0, %v1474_v45 }
 0x175   : > { %v1161_v13 = vand.u32 2147483647, %v1155_v11  ;;  %v1162_v14 = vmul.f32 0.3275911, %v1160_v12  ;;  %v1188_v18 = vsub.f32 0.0, %v1160_v12  ;;  %vm1157_vm11 = vcmp.ge.f32.partialorder %v1155_v11, 0.0 }
 0x176   : > { %v1159_v49 = vsel %vm1157_vm11, 1.0, %v1474_v45 }
 0x177   : > { %v1163_v15 = vmul.f32 0.3275911, %v1161_v13  ;;  %v1164_v16 = vadd.f32 1.0, %v1162_v14  ;;  %v1189_v19 = vsub.f32 0.0, %v1161_v13  ;;  %v1190_v20 = vmul.f32 %v1188_v18, %v1160_v12 }
 0x179   : > { %v1165_v17 = vadd.f32 1.0, %v1163_v15  ;;  %1394 = vrcp.f32 %v1164_v16  ;;  %v1191_v21 = vmul.f32 %v1189_v19, %v1161_v13  ;;  %v1192_v24 = vmul.f32 1.442695, %v1190_v20 }
 0x17b   : > { %1396 = vrcp.f32 %v1165_v17  ;;  %v1194_v28 = vmul.f32 1.442695, %v1191_v21 }
 0x17c   : > { %1398 = vpow2.f32 %v1192_v24 }
 0x17d   : > { %1400 = vpow2.f32 %v1194_v28 }
 0x186   : > { %v1395_v22 = vpop.eup %1394 }
 0x187   : > { %v1170_v23 = vmul.f32 1.0614054, %v1395_v22 }
 0x188   : > { %v1397_v25 = vpop.eup %1396 }
 0x189   : > { %v1171_v26 = vmul.f32 1.0614054, %v1397_v25  ;;  %v1172_v27 = vadd.f32 -1.4531521, %v1170_v23  ;;  %v1399_v39 = vpop.eup %1398 }
 0x18a   : > { %v1401_v42 = vpop.eup %1400 }
 0x18b   : > { %v1173_v29 = vadd.f32 -1.4531521, %v1171_v26  ;;  %v1174_v30 = vmul.f32 %v1395_v22, %v1172_v27 }
 0x18d   : > { %v1175_v31 = vmul.f32 %v1397_v25, %v1173_v29  ;;  %v1176_v32 = vadd.f32 1.4214138, %v1174_v30 }
 0x18f   : > { %v1177_v8 = vadd.f32 1.4214138, %v1175_v31  ;;  %v1178_v33 = vmul.f32 %v1395_v22, %v1176_v32 }
 0x191   : > { %v1179_v9 = vmul.f32 %v1397_v25, %v1177_v8  ;;  %v1180_v10 = vadd.f32 -0.28449672, %v1178_v33 }
 0x193   : > { %v1181_v1 = vadd.f32 -0.28449672, %v1179_v9  ;;  %v1182_v34 = vmul.f32 %v1395_v22, %v1180_v10 }
 0x195   : > { %v1183_v35 = vmul.f32 %v1397_v25, %v1181_v1  ;;  %v1184_v36 = vadd.f32 0.2548296, %v1182_v34 }
 0x197   : > { %v1185_v37 = vadd.f32 0.2548296, %v1183_v35  ;;  %v1186_v38 = vmul.f32 %v1395_v22, %v1184_v36 }
 0x199   : > { %v1187_v40 = vmul.f32 %v1397_v25, %v1185_v37  ;;  %v1196_v41 = vmul.f32 %v1399_v39, %v1186_v38 }
 0x19b   : > { %v1197_v43 = vmul.f32 %v1401_v42, %v1187_v40  ;;  %v1198_v44 = vsub.f32 1.0, %v1196_v41 }
 0x19d   : > { %v1199_v47 = vsub.f32 1.0, %v1197_v43  ;;  %v1200_v48 = vmul.f32 %v1198_v44, %v1158_v46 }
 0x19f   : > { %v1201_v50 = vmul.f32 %v1199_v47, %v1159_v49  ;;  %v1202_v51 = vadd.f32 1.0, %v1200_v48 }
 0x1a1   : > { %v1203_v54 = vadd.f32 1.0, %v1201_v50  ;;  %v1204_v55 = vmul.f32 %v1202_v51, %v1152_v52 }
 0x1a3   : > { %v1205_v56 = vmul.f32 %v1203_v54, %v1153_v53 }
 0x1a5   : > { %v1208_v57 = vcombine.low %v1204_v55, %v1205_v56 }
 0x1a7   : > { %1210 = vst [vmem:[%s190_s30] sm:$0xff] %v1208_v57 }
 0x1a8   : > { %1415 = shalt.err (!%p1412_p3)
}
 0x1a9   : > { %s1416_s13 = scalar_lea.hbm %s1224_s8, 128  ;;  %s1420_s22 = scalar_lea.hbm %s1742_s4, 256 }
 0x1aa   : > { %p1417_p4 = scmp.ne.s32.totalorder %s1224_s8, %s1416_s13  ;;  %p1421_p9 = scmp.lt.s32.totalorder %s1224_s8, %s1742_s4 }
 0x1ab   : > { %p1422_p10 = scmp.lt.s32.totalorder %s1420_s22, %s1416_s13 }
 0x1ac   : > { %p1418_p7 = pnand %p1417_p4, %p1539_p5 }
 0x1ad   : > { %p1423_p11 = por %p1422_p10, %p1421_p9 }
 0x1ae   : > { %p1419_p8 = pneg %p1418_p7 }
 0x1b0   : > { %p1424_p12 = pnand %p1423_p11, %p1419_p8 }
 0x1b2   : > { %1427 = shalt.err (!%p1424_p12)
}
 0x1b3   : > { %1342 = dma.vmem_to_hbm [thread:$0]  (%p1539_p5), %s1227_s5, 128, %s1224_s8, %s1212_s9  }
 0x1b4 PF: > { %p1348_p13 = scmp.ge.s32.totalorder %s1462_s18, 2  ;;  %s1238_s28 = sand.u32 1, %s1450_s15  }
 0x1b5   : > { %s1239_s29 = scalar_lea.sflag [#allocation3], %s1238_s28 }
 0x1b6   : > { %p1345_p0 = pnand %p1348_p13, %p1543_p6 }
 0x1b8   : > { %p1346_p1 = pneg %p1345_p0 }
 0x1ba   : > { %1445 = dma.done.wait (%p1346_p1), %s1239_s29, 128  }
 0x1bb   : > { %1447 = vsyncadd (%p1346_p1), %s1239_s29, 4294967168  ;;  %p14_p2 = scmp.ge.s32.totalorder %s1526_s21, 4   ;;  %s1745_s15 = smov %s1454_s16 }
 0x1bc   : > { %s1746_s16 = smov %s1458_s17  ;;  %s1747_s17 = smov %s1537_s24 }
 0x1bd   : > { %s1748_s18 = smov %s1526_s21  ;;  %16 = sbr.rel (!%p14_p2) target bundleno = 3 (0x3), region = 87 }
 0x1c2   :  { %1244 = vsyncpa [#allocation3], 1 }
 0x1c3   :  { %1246 = vsyncpa [#allocation3 + $0x1], 1 }

</bundles_post_ra>
